<compile_context>
chip_gen: v6e
topology: v6e:2x2x1
jax: 0.10.0
libtpu: 0.0.40
codegen_flags: <defaults>
</compile_context>

<pallas_src>
import math
import functools

import numpy as np
import jax
import jax.numpy as jnp
from jax import lax
from jax.experimental import pallas as pl
from jax.experimental.pallas import tpu as pltpu


# ----------------------------------------------------------------------------
# pltpu.roll direction probe (tiny one-off kernel, cached).  The 3x3-conv taps
# need result[p] = g[(p + d) % HW]; the probe pins down which rotate direction
# pltpu.roll implements.  Only probed on a real TPU backend; the jnp.roll
# fallback is reached solely if the probe itself fails.
# ----------------------------------------------------------------------------
_ROLL_MODE = None


def _detect_roll_mode():
    global _ROLL_MODE
    if _ROLL_MODE is not None:
        return _ROLL_MODE
    mode = "jnp"
    if jax.default_backend() == "tpu":
        try:
            def probe(x_ref, o_ref):
                o_ref[...] = pltpu.roll(x_ref[...], 1, axis=1)

            x = jnp.tile(jnp.arange(128, dtype=jnp.float32), (8, 1))
            out = jax.device_get(
                pl.pallas_call(
                    probe,
                    out_shape=jax.ShapeDtypeStruct((8, 128), jnp.float32))(x))
            row = out[0]
            if row[0] == 127.0 and row[1] == 0.0:
                mode = "pltpu_fwd"        # pltpu.roll(x, s) == np.roll(x, s)
            elif row[0] == 1.0 and row[127] == 0.0:
                mode = "pltpu_rev"        # pltpu.roll(x, s) == np.roll(x, -s)
        except Exception:
            mode = "jnp"
    _ROLL_MODE = mode
    return mode


def _shift_lanes(v, delta, size, roll_mode):
    """result[..., p] = v[..., (p + delta) % size]  (callers mask wrapped lanes)."""
    delta = delta % size
    if delta == 0:
        return v
    if roll_mode == "pltpu_fwd":
        return pltpu.roll(v, (size - delta) % size, axis=1)
    if roll_mode == "pltpu_rev":
        return pltpu.roll(v, delta, axis=1)
    return jnp.roll(v, -delta, axis=1)   # fallback (slice+concat lowering)


def _tap_masks(H, W):
    """(9, H*W) f32 validity masks for the 3x3 taps, precomputed on host."""
    yy, xx = np.meshgrid(np.arange(H), np.arange(W), indexing="ij")
    yy = yy.reshape(-1)
    xx = xx.reshape(-1)
    rows = []
    for dy in (-1, 0, 1):
        for dx in (-1, 0, 1):
            valid = ((yy + dy >= 0) & (yy + dy < H) &
                     (xx + dx >= 0) & (xx + dx < W))
            rows.append(valid.astype(np.float32))
    return np.stack(rows, axis=0)


# ----------------------------------------------------------------------------
# Kernel (one image per grid step; leading batch dim squeezed out of refs)
# ----------------------------------------------------------------------------
def _conv_normal_kernel(x_ref, w1t_ref, w2_ref, bn_ref, mask_ref, out_ref, *,
                        W, HW, C_in, Ca, Cb2, is_bn_after, roll_mode,
                        matmul_dtype):
    f32 = jnp.float32
    md = f32 if matmul_dtype is None else matmul_dtype

    # Folded-BN affine params (channels on sublanes, broadcast over HW lanes).
    sa = bn_ref[0:Ca, :]
    ba = bn_ref[Ca:2 * Ca, :]
    sb = bn_ref[2 * Ca:2 * Ca + Cb2, :]
    bb = bn_ref[2 * Ca + Cb2:2 * (Ca + Cb2), :]

    x_raw = x_ref[...]                   # (C_in, HW), original dtype (passthrough)
    x = x_raw.astype(f32)

    xin = x if is_bn_after else jnp.maximum(x * sa + ba, 0.0)

    # 1x1 conv == one MXU matmul: (C_b, C_in) @ (C_in, HW).
    h = jnp.dot(w1t_ref[...].astype(md), xin.astype(md),
                preferred_element_type=f32)                       # (C_b, HW)
    if is_bn_after:
        h = jnp.maximum(h * sa + ba, 0.0)
    else:
        h = jnp.maximum(h * sb + bb, 0.0)
    h = h.astype(md)

    # 3x3 conv (stride 1, pad 1), matmul-first per tap:
    #   y = sum_j mask_j * shift_j( W_j @ h )
    # Rolls/masks act on the small (C_out, HW) results instead of (C_b, HW)
    # taps; no (9*C_b, HW) im2col slab is ever materialized.
    offsets = [dy * W + dx for dy in (-1, 0, 1) for dx in (-1, 0, 1)]
    y = None
    for j, off in enumerate(offsets):
        g = jnp.dot(w2_ref[j].astype(md), h, preferred_element_type=f32)
        if off != 0:                     # center tap: no roll, mask all-ones
            g = _shift_lanes(g, off, HW, roll_mode)
            g = g * mask_ref[j:j + 1, :]
        y = g if y is None else y + g

    if is_bn_after:
        y = jnp.maximum(y * sb + bb, 0.0)

    # Fused channel concat (torch.cat dim=1).  Passthrough is stored straight
    # from x_ref (no f32 round trip).  With C_in/C_out < 8 these are masked
    # sublane stores; at real sizes (C_in a multiple of 8) they become
    # full-tile unmasked stores.
    out_ref[0:C_in, :] = x_raw.astype(out_ref.dtype)
    out_ref[C_in:, :] = y.astype(out_ref.dtype)


# ----------------------------------------------------------------------------
# Wrapper
# ----------------------------------------------------------------------------
def conv_normal(x, params, *, is_bn_after, matmul_dtype=None):
    """ConvNormal.forward: concat([x, ConvWithBottleneck(x)], dim=1), NCHW.

    `matmul_dtype=jnp.bfloat16` enables the bf16-native MXU path (worth it at
    real channel counts on all generations); default keeps f32 operands so the
    check vs a HIGHEST-precision reference holds.  BN/ReLU/mask math always
    stays in f32 (v5e has no bf16 VPU).
    """
    if isinstance(x, (list, tuple)):      # mirror the PyTorch list handling
        x = x[0]
    N, C_in, H, W = x.shape
    w1, w2, sa, ba, sb, bb = params
    C_b = w1.shape[1]
    C_out = w2.shape[-1]
    HW = H * W

    # Layout plumbing: free reshapes for x; tiny host-side weight transposes.
    x_flat = x.reshape(N, C_in, HW)
    w1t = jnp.transpose(w1)                                        # (C_b, C_in)
    w2_taps = jnp.transpose(w2.reshape(9, C_b, C_out), (0, 2, 1))  # (9, C_out, C_b)
    sa, ba, sb, bb = (v.reshape(-1) for v in (sa, ba, sb, bb))
    Ca, Cb2 = sa.shape[0], sb.shape[0]
    bn_packed = jnp.concatenate([sa, ba, sb, bb]).reshape(-1, 1).astype(jnp.float32)
    masks = jnp.asarray(_tap_masks(H, W))                          # (9, H*W)

    roll_mode = _detect_roll_mode()

    kernel = functools.partial(
        _conv_normal_kernel, W=W, HW=HW, C_in=C_in, Ca=Ca, Cb2=Cb2,
        is_bn_after=is_bn_after, roll_mode=roll_mode, matmul_dtype=matmul_dtype)

    # TODO(synk): for DenseNet-scale H*W (e.g. 56x56) row-tile the spatial axis
    #             with a 1-row halo and set vmem_limit_bytes for v7x's 64 MiB.
    out_flat = pl.pallas_call(
        kernel,
        out_shape=jax.ShapeDtypeStruct((N, C_in + C_out, HW), x.dtype),
        grid_spec=pltpu.PrefetchScalarGridSpec(
            num_scalar_prefetch=0,
            grid=(N,),   # 1 image / step: pipelined DMA + even grid for v7x 2-TC
            in_specs=[
                pl.BlockSpec((None, C_in, HW), lambda i: (i, 0, 0)),
                pl.BlockSpec((C_b, C_in), lambda i: (0, 0)),
                pl.BlockSpec((9, C_out, C_b), lambda i: (0, 0, 0)),
                pl.BlockSpec((2 * (Ca + Cb2), 1), lambda i: (0, 0)),
                pl.BlockSpec((9, HW), lambda i: (0, 0)),
            ],
            out_specs=pl.BlockSpec((None, C_in + C_out, HW),
                                   lambda i: (i, 0, 0)),
        ),
        compiler_params=pltpu.CompilerParams(
            dimension_semantics=("parallel",)),
    )(x_flat, w1t, w2_taps, bn_packed, masks)

    return out_flat.reshape(N, C_in + C_out, H, W)


# ----------------------------------------------------------------------------
# Parameter init + pure-JAX reference
# ----------------------------------------------------------------------------
def init_params(key, in_channels, out_channels, bottleneck_factor, is_bn_after,
                dtype=jnp.float32):
    C_b = out_channels * bottleneck_factor
    k1, k2, k3, k4 = jax.random.split(key, 4)
    w1 = jax.random.normal(k1, (in_channels, C_b), dtype) / math.sqrt(in_channels)
    w2 = jax.random.normal(k2, (3, 3, C_b, out_channels), dtype) / math.sqrt(9 * C_b)

    def bn_fold(k, c):
        ka, kb, kc, kd = jax.random.split(k, 4)
        gamma = 1.0 + 0.1 * jax.random.normal(ka, (c,), dtype)
        beta = 0.1 * jax.random.normal(kb, (c,), dtype)
        mean = 0.1 * jax.random.normal(kc, (c,), dtype)
        var = jnp.abs(1.0 + 0.1 * jax.random.normal(kd, (c,), dtype))
        scale = gamma / jnp.sqrt(var + 1e-5)
        shift = beta - mean * scale
        return scale, shift

    if is_bn_after:
        sa, ba = bn_fold(k3, C_b)            # BN after 1x1 conv
        sb, bb = bn_fold(k4, out_channels)   # BN after 3x3 conv
    else:
        sa, ba = bn_fold(k3, in_channels)    # BN on block input
        sb, bb = bn_fold(k4, C_b)            # BN after 1x1 conv
    return w1, w2, sa, ba, sb, bb


def conv_normal_reference(x_nchw, params, *, is_bn_after):
    """Pure-JAX reference (correctness check)."""
    w1, w2, sa, ba, sb, bb = params
    x = jnp.transpose(x_nchw, (0, 2, 3, 1)).astype(jnp.float32)
    relu = lambda z: jnp.maximum(z, 0.0)
    aff = lambda z, s, b: z * s.reshape(1, 1, 1, -1) + b.reshape(1, 1, 1, -1)
    c1 = lambda h: jnp.einsum('nhwc,cd->nhwd', h, w1,
                              precision=lax.Precision.HIGHEST)
    c3 = lambda h: lax.conv_general_dilated(
        h, w2, window_strides=(1, 1), padding='SAME',
        dimension_numbers=('NHWC', 'HWIO', 'NHWC'),
        precision=lax.Precision.HIGHEST)
    if is_bn_after:
        h = relu(aff(c1(x), sa, ba))
        y = relu(aff(c3(h), sb, bb))
    else:
        h = relu(aff(c1(relu(aff(x, sa, ba))), sb, bb))
        y = c3(h)
    y = jnp.transpose(y, (0, 3, 1, 2)).astype(x_nchw.dtype)
    return jnp.concatenate([x_nchw, y], axis=1)


if __name__ == "__main__":
    # Module config: ConvNormal(in_channels=4, out_channels=4,
    #                           isBatchNormAfter=False, bottleneckFactor=4)
    in_channels, out_channels, bottleneck_factor = 4, 4, 4
    is_bn_after = False
    N, H, W = 2, 16, 16

    key = jax.random.PRNGKey(0)
    kx, kp = jax.random.split(key)
    x = jax.random.normal(kx, (N, in_channels, H, W), jnp.float32)   # NCHW
    params = init_params(kp, in_channels, out_channels, bottleneck_factor,
                         is_bn_after)

    _detect_roll_mode()   # prime the (cached) pltpu.roll direction probe

    fwd = jax.jit(functools.partial(conv_normal, is_bn_after=is_bn_after))
    out = jax.block_until_ready(fwd(x, params))
    assert out.shape == (N, in_channels + out_channels, H, W), out.shape

    ref = jax.block_until_ready(
        conv_normal_reference(x, params, is_bn_after=is_bn_after))
    max_err = float(jnp.max(jnp.abs(out - ref)))
    # tolerance covers TPU MXU f32 matmul-pass rounding vs the HIGHEST reference
    assert jnp.allclose(out, ref, atol=2e-3, rtol=2e-3), max_err

    print("KERNEL_OK")
</pallas_src>

<mosaic_0001>
module attributes {stable_mosaic.version = 11 : i64} {
  func.func @_conv_normal_kernel(%arg0: i32, %arg1: memref<1x4x256xf32, #tpu.memory_space<vmem>>, %arg2: memref<16x4xf32, #tpu.memory_space<vmem>>, %arg3: memref<9x4x16xf32, #tpu.memory_space<vmem>>, %arg4: memref<40x1xf32, #tpu.memory_space<vmem>>, %arg5: memref<9x256xf32, #tpu.memory_space<vmem>>, %arg6: memref<1x8x256xf32, #tpu.memory_space<vmem>>) attributes {dimension_semantics = [#tpu.dimension_semantics<parallel>], iteration_bounds = array<i64: 2>, scalar_prefetch = 0 : i64, scratch_operands = 0 : i64, tpu.core_type = #tpu.core_type<tc>, window_params = [{transform_indices = @transform_0, window_bounds = array<i64: 1, 4, 256>}, {pipeline_mode = #tpu.pipeline_mode<synchronous>, transform_indices = @transform_1, window_bounds = array<i64: 16, 4>}, {pipeline_mode = #tpu.pipeline_mode<synchronous>, transform_indices = @transform_2, window_bounds = array<i64: 9, 4, 16>}, {pipeline_mode = #tpu.pipeline_mode<synchronous>, transform_indices = @transform_3, window_bounds = array<i64: 40, 1>}, {pipeline_mode = #tpu.pipeline_mode<synchronous>, transform_indices = @transform_4, window_bounds = array<i64: 9, 256>}, {transform_indices = @transform_5, window_bounds = array<i64: 1, 8, 256>}]} {
    %c0 = arith.constant 0 : index
    %c0_0 = arith.constant 0 : index
    %0 = vector.load %arg4[%c0, %c0_0] : memref<40x1xf32, #tpu.memory_space<vmem>>, vector<4x1xf32>
    %c4 = arith.constant 4 : index
    %c0_1 = arith.constant 0 : index
    %1 = vector.load %arg4[%c4, %c0_1] : memref<40x1xf32, #tpu.memory_space<vmem>>, vector<4x1xf32>
    %c8 = arith.constant 8 : index
    %c0_2 = arith.constant 0 : index
    %2 = vector.load %arg4[%c8, %c0_2] : memref<40x1xf32, #tpu.memory_space<vmem>>, vector<16x1xf32>
    %c24 = arith.constant 24 : index
    %c0_3 = arith.constant 0 : index
    %3 = vector.load %arg4[%c24, %c0_3] : memref<40x1xf32, #tpu.memory_space<vmem>>, vector<16x1xf32>
    %c0_4 = arith.constant 0 : index
    %c0_5 = arith.constant 0 : index
    %c0_6 = arith.constant 0 : index
    %4 = vector.load %arg1[%c0_4, %c0_5, %c0_6] : memref<1x4x256xf32, #tpu.memory_space<vmem>>, vector<1x4x256xf32>
    %5 = vector.shape_cast %4 : vector<1x4x256xf32> to vector<4x256xf32>
    %6 = vector.broadcast %0 : vector<4x1xf32> to vector<4x256xf32>
    %7 = arith.mulf %5, %6 : vector<4x256xf32>
    %8 = vector.broadcast %1 : vector<4x1xf32> to vector<4x256xf32>
    %9 = arith.addf %7, %8 : vector<4x256xf32>
    %cst = arith.constant 0.000000e+00 : f32
    %10 = vector.broadcast %cst : f32 to vector<4x256xf32>
    %11 = arith.maximumf %9, %10 : vector<4x256xf32>
    %c0_7 = arith.constant 0 : index
    %c0_8 = arith.constant 0 : index
    %12 = vector.load %arg2[%c0_7, %c0_8] : memref<16x4xf32, #tpu.memory_space<vmem>>, vector<16x4xf32>
    %cst_9 = arith.constant dense<0.000000e+00> : vector<16x256xf32>
    %13 = tpu.matmul %12, %11, %cst_9 {dimension_numbers = #tpu.dot_dimension_numbers<[1], [0], [0], [1], [0, 0, 1, 1], [], []>} : vector<16x4xf32>, vector<4x256xf32>, vector<16x256xf32> -> vector<16x256xf32>
    %14 = vector.broadcast %2 : vector<16x1xf32> to vector<16x256xf32>
    %15 = arith.mulf %13, %14 : vector<16x256xf32>
    %16 = vector.broadcast %3 : vector<16x1xf32> to vector<16x256xf32>
    %17 = arith.addf %15, %16 : vector<16x256xf32>
    %cst_10 = arith.constant 0.000000e+00 : f32
    %18 = vector.broadcast %cst_10 : f32 to vector<16x256xf32>
    %19 = arith.maximumf %17, %18 : vector<16x256xf32>
    %c0_11 = arith.constant 0 : index
    %c0_12 = arith.constant 0 : index
    %c0_13 = arith.constant 0 : index
    %20 = vector.load %arg3[%c0_11, %c0_12, %c0_13] : memref<9x4x16xf32, #tpu.memory_space<vmem>>, vector<1x4x16xf32>
    %21 = vector.shape_cast %20 : vector<1x4x16xf32> to vector<4x16xf32>
    %cst_14 = arith.constant dense<0.000000e+00> : vector<4x256xf32>
    %22 = tpu.matmul %21, %19, %cst_14 {dimension_numbers = #tpu.dot_dimension_numbers<[1], [0], [0], [1], [0, 0, 1, 1], [], []>} : vector<4x16xf32>, vector<16x256xf32>, vector<4x256xf32> -> vector<4x256xf32>
    %23 = vector.extract_strided_slice %22 {offsets = [0, 239], sizes = [4, 17], strides = [1, 1]} : vector<4x256xf32> to vector<4x17xf32>
    %24 = vector.extract_strided_slice %22 {offsets = [0, 0], sizes = [4, 239], strides = [1, 1]} : vector<4x256xf32> to vector<4x239xf32>
    %25 = tpu.concatenate %23, %24 in 1 : vector<4x17xf32>, vector<4x239xf32> -> vector<4x256xf32>
    %c0_15 = arith.constant 0 : index
    %c0_16 = arith.constant 0 : index
    %26 = vector.load %arg5[%c0_15, %c0_16] : memref<9x256xf32, #tpu.memory_space<vmem>>, vector<1x256xf32>
    %27 = vector.broadcast %26 : vector<1x256xf32> to vector<4x256xf32>
    %28 = arith.mulf %25, %27 : vector<4x256xf32>
    %c1 = arith.constant 1 : index
    %c0_17 = arith.constant 0 : index
    %c0_18 = arith.constant 0 : index
    %29 = vector.load %arg3[%c1, %c0_17, %c0_18] : memref<9x4x16xf32, #tpu.memory_space<vmem>>, vector<1x4x16xf32>
    %30 = vector.shape_cast %29 : vector<1x4x16xf32> to vector<4x16xf32>
    %cst_19 = arith.constant dense<0.000000e+00> : vector<4x256xf32>
    %31 = tpu.matmul %30, %19, %cst_19 {dimension_numbers = #tpu.dot_dimension_numbers<[1], [0], [0], [1], [0, 0, 1, 1], [], []>} : vector<4x16xf32>, vector<16x256xf32>, vector<4x256xf32> -> vector<4x256xf32>
    %32 = vector.extract_strided_slice %31 {offsets = [0, 240], sizes = [4, 16], strides = [1, 1]} : vector<4x256xf32> to vector<4x16xf32>
    %33 = vector.extract_strided_slice %31 {offsets = [0, 0], sizes = [4, 240], strides = [1, 1]} : vector<4x256xf32> to vector<4x240xf32>
    %34 = tpu.concatenate %32, %33 in 1 : vector<4x16xf32>, vector<4x240xf32> -> vector<4x256xf32>
    %c1_20 = arith.constant 1 : index
    %c0_21 = arith.constant 0 : index
    %35 = vector.load %arg5[%c1_20, %c0_21] : memref<9x256xf32, #tpu.memory_space<vmem>>, vector<1x256xf32>
    %36 = vector.broadcast %35 : vector<1x256xf32> to vector<4x256xf32>
    %37 = arith.mulf %34, %36 : vector<4x256xf32>
    %38 = arith.addf %28, %37 : vector<4x256xf32>
    %c2 = arith.constant 2 : index
    %c0_22 = arith.constant 0 : index
    %c0_23 = arith.constant 0 : index
    %39 = vector.load %arg3[%c2, %c0_22, %c0_23] : memref<9x4x16xf32, #tpu.memory_space<vmem>>, vector<1x4x16xf32>
    %40 = vector.shape_cast %39 : vector<1x4x16xf32> to vector<4x16xf32>
    %cst_24 = arith.constant dense<0.000000e+00> : vector<4x256xf32>
    %41 = tpu.matmul %40, %19, %cst_24 {dimension_numbers = #tpu.dot_dimension_numbers<[1], [0], [0], [1], [0, 0, 1, 1], [], []>} : vector<4x16xf32>, vector<16x256xf32>, vector<4x256xf32> -> vector<4x256xf32>
    %42 = vector.extract_strided_slice %41 {offsets = [0, 241], sizes = [4, 15], strides = [1, 1]} : vector<4x256xf32> to vector<4x15xf32>
    %43 = vector.extract_strided_slice %41 {offsets = [0, 0], sizes = [4, 241], strides = [1, 1]} : vector<4x256xf32> to vector<4x241xf32>
    %44 = tpu.concatenate %42, %43 in 1 : vector<4x15xf32>, vector<4x241xf32> -> vector<4x256xf32>
    %c2_25 = arith.constant 2 : index
    %c0_26 = arith.constant 0 : index
    %45 = vector.load %arg5[%c2_25, %c0_26] : memref<9x256xf32, #tpu.memory_space<vmem>>, vector<1x256xf32>
    %46 = vector.broadcast %45 : vector<1x256xf32> to vector<4x256xf32>
    %47 = arith.mulf %44, %46 : vector<4x256xf32>
    %48 = arith.addf %38, %47 : vector<4x256xf32>
    %c3 = arith.constant 3 : index
    %c0_27 = arith.constant 0 : index
    %c0_28 = arith.constant 0 : index
    %49 = vector.load %arg3[%c3, %c0_27, %c0_28] : memref<9x4x16xf32, #tpu.memory_space<vmem>>, vector<1x4x16xf32>
    %50 = vector.shape_cast %49 : vector<1x4x16xf32> to vector<4x16xf32>
    %cst_29 = arith.constant dense<0.000000e+00> : vector<4x256xf32>
    %51 = tpu.matmul %50, %19, %cst_29 {dimension_numbers = #tpu.dot_dimension_numbers<[1], [0], [0], [1], [0, 0, 1, 1], [], []>} : vector<4x16xf32>, vector<16x256xf32>, vector<4x256xf32> -> vector<4x256xf32>
    %52 = vector.extract_strided_slice %51 {offsets = [0, 255], sizes = [4, 1], strides = [1, 1]} : vector<4x256xf32> to vector<4x1xf32>
    %53 = vector.extract_strided_slice %51 {offsets = [0, 0], sizes = [4, 255], strides = [1, 1]} : vector<4x256xf32> to vector<4x255xf32>
    %54 = tpu.concatenate %52, %53 in 1 : vector<4x1xf32>, vector<4x255xf32> -> vector<4x256xf32>
    %c3_30 = arith.constant 3 : index
    %c0_31 = arith.constant 0 : index
    %55 = vector.load %arg5[%c3_30, %c0_31] : memref<9x256xf32, #tpu.memory_space<vmem>>, vector<1x256xf32>
    %56 = vector.broadcast %55 : vector<1x256xf32> to vector<4x256xf32>
    %57 = arith.mulf %54, %56 : vector<4x256xf32>
    %58 = arith.addf %48, %57 : vector<4x256xf32>
    %c4_32 = arith.constant 4 : index
    %c0_33 = arith.constant 0 : index
    %c0_34 = arith.constant 0 : index
    %59 = vector.load %arg3[%c4_32, %c0_33, %c0_34] : memref<9x4x16xf32, #tpu.memory_space<vmem>>, vector<1x4x16xf32>
    %60 = vector.shape_cast %59 : vector<1x4x16xf32> to vector<4x16xf32>
    %cst_35 = arith.constant dense<0.000000e+00> : vector<4x256xf32>
    %61 = tpu.matmul %60, %19, %cst_35 {dimension_numbers = #tpu.dot_dimension_numbers<[1], [0], [0], [1], [0, 0, 1, 1], [], []>} : vector<4x16xf32>, vector<16x256xf32>, vector<4x256xf32> -> vector<4x256xf32>
    %62 = arith.addf %58, %61 : vector<4x256xf32>
    %c5 = arith.constant 5 : index
    %c0_36 = arith.constant 0 : index
    %c0_37 = arith.constant 0 : index
    %63 = vector.load %arg3[%c5, %c0_36, %c0_37] : memref<9x4x16xf32, #tpu.memory_space<vmem>>, vector<1x4x16xf32>
    %64 = vector.shape_cast %63 : vector<1x4x16xf32> to vector<4x16xf32>
    %cst_38 = arith.constant dense<0.000000e+00> : vector<4x256xf32>
    %65 = tpu.matmul %64, %19, %cst_38 {dimension_numbers = #tpu.dot_dimension_numbers<[1], [0], [0], [1], [0, 0, 1, 1], [], []>} : vector<4x16xf32>, vector<16x256xf32>, vector<4x256xf32> -> vector<4x256xf32>
    %66 = vector.extract_strided_slice %65 {offsets = [0, 1], sizes = [4, 255], strides = [1, 1]} : vector<4x256xf32> to vector<4x255xf32>
    %67 = vector.extract_strided_slice %65 {offsets = [0, 0], sizes = [4, 1], strides = [1, 1]} : vector<4x256xf32> to vector<4x1xf32>
    %68 = tpu.concatenate %66, %67 in 1 : vector<4x255xf32>, vector<4x1xf32> -> vector<4x256xf32>
    %c5_39 = arith.constant 5 : index
    %c0_40 = arith.constant 0 : index
    %69 = vector.load %arg5[%c5_39, %c0_40] : memref<9x256xf32, #tpu.memory_space<vmem>>, vector<1x256xf32>
    %70 = vector.broadcast %69 : vector<1x256xf32> to vector<4x256xf32>
    %71 = arith.mulf %68, %70 : vector<4x256xf32>
    %72 = arith.addf %62, %71 : vector<4x256xf32>
    %c6 = arith.constant 6 : index
    %c0_41 = arith.constant 0 : index
    %c0_42 = arith.constant 0 : index
    %73 = vector.load %arg3[%c6, %c0_41, %c0_42] : memref<9x4x16xf32, #tpu.memory_space<vmem>>, vector<1x4x16xf32>
    %74 = vector.shape_cast %73 : vector<1x4x16xf32> to vector<4x16xf32>
    %cst_43 = arith.constant dense<0.000000e+00> : vector<4x256xf32>
    %75 = tpu.matmul %74, %19, %cst_43 {dimension_numbers = #tpu.dot_dimension_numbers<[1], [0], [0], [1], [0, 0, 1, 1], [], []>} : vector<4x16xf32>, vector<16x256xf32>, vector<4x256xf32> -> vector<4x256xf32>
    %76 = vector.extract_strided_slice %75 {offsets = [0, 15], sizes = [4, 241], strides = [1, 1]} : vector<4x256xf32> to vector<4x241xf32>
    %77 = vector.extract_strided_slice %75 {offsets = [0, 0], sizes = [4, 15], strides = [1, 1]} : vector<4x256xf32> to vector<4x15xf32>
    %78 = tpu.concatenate %76, %77 in 1 : vector<4x241xf32>, vector<4x15xf32> -> vector<4x256xf32>
    %c6_44 = arith.constant 6 : index
    %c0_45 = arith.constant 0 : index
    %79 = vector.load %arg5[%c6_44, %c0_45] : memref<9x256xf32, #tpu.memory_space<vmem>>, vector<1x256xf32>
    %80 = vector.broadcast %79 : vector<1x256xf32> to vector<4x256xf32>
    %81 = arith.mulf %78, %80 : vector<4x256xf32>
    %82 = arith.addf %72, %81 : vector<4x256xf32>
    %c7 = arith.constant 7 : index
    %c0_46 = arith.constant 0 : index
    %c0_47 = arith.constant 0 : index
    %83 = vector.load %arg3[%c7, %c0_46, %c0_47] : memref<9x4x16xf32, #tpu.memory_space<vmem>>, vector<1x4x16xf32>
    %84 = vector.shape_cast %83 : vector<1x4x16xf32> to vector<4x16xf32>
    %cst_48 = arith.constant dense<0.000000e+00> : vector<4x256xf32>
    %85 = tpu.matmul %84, %19, %cst_48 {dimension_numbers = #tpu.dot_dimension_numbers<[1], [0], [0], [1], [0, 0, 1, 1], [], []>} : vector<4x16xf32>, vector<16x256xf32>, vector<4x256xf32> -> vector<4x256xf32>
    %86 = vector.extract_strided_slice %85 {offsets = [0, 16], sizes = [4, 240], strides = [1, 1]} : vector<4x256xf32> to vector<4x240xf32>
    %87 = vector.extract_strided_slice %85 {offsets = [0, 0], sizes = [4, 16], strides = [1, 1]} : vector<4x256xf32> to vector<4x16xf32>
    %88 = tpu.concatenate %86, %87 in 1 : vector<4x240xf32>, vector<4x16xf32> -> vector<4x256xf32>
    %c7_49 = arith.constant 7 : index
    %c0_50 = arith.constant 0 : index
    %89 = vector.load %arg5[%c7_49, %c0_50] : memref<9x256xf32, #tpu.memory_space<vmem>>, vector<1x256xf32>
    %90 = vector.broadcast %89 : vector<1x256xf32> to vector<4x256xf32>
    %91 = arith.mulf %88, %90 : vector<4x256xf32>
    %92 = arith.addf %82, %91 : vector<4x256xf32>
    %c8_51 = arith.constant 8 : index
    %c0_52 = arith.constant 0 : index
    %c0_53 = arith.constant 0 : index
    %93 = vector.load %arg3[%c8_51, %c0_52, %c0_53] : memref<9x4x16xf32, #tpu.memory_space<vmem>>, vector<1x4x16xf32>
    %94 = vector.shape_cast %93 : vector<1x4x16xf32> to vector<4x16xf32>
    %cst_54 = arith.constant dense<0.000000e+00> : vector<4x256xf32>
    %95 = tpu.matmul %94, %19, %cst_54 {dimension_numbers = #tpu.dot_dimension_numbers<[1], [0], [0], [1], [0, 0, 1, 1], [], []>} : vector<4x16xf32>, vector<16x256xf32>, vector<4x256xf32> -> vector<4x256xf32>
    %96 = vector.extract_strided_slice %95 {offsets = [0, 17], sizes = [4, 239], strides = [1, 1]} : vector<4x256xf32> to vector<4x239xf32>
    %97 = vector.extract_strided_slice %95 {offsets = [0, 0], sizes = [4, 17], strides = [1, 1]} : vector<4x256xf32> to vector<4x17xf32>
    %98 = tpu.concatenate %96, %97 in 1 : vector<4x239xf32>, vector<4x17xf32> -> vector<4x256xf32>
    %c8_55 = arith.constant 8 : index
    %c0_56 = arith.constant 0 : index
    %99 = vector.load %arg5[%c8_55, %c0_56] : memref<9x256xf32, #tpu.memory_space<vmem>>, vector<1x256xf32>
    %100 = vector.broadcast %99 : vector<1x256xf32> to vector<4x256xf32>
    %101 = arith.mulf %98, %100 : vector<4x256xf32>
    %102 = arith.addf %92, %101 : vector<4x256xf32>
    %c0_57 = arith.constant 0 : index
    %c0_58 = arith.constant 0 : index
    %c0_59 = arith.constant 0 : index
    %103 = vector.load %arg6[%c0_57, %c0_58, %c0_59] : memref<1x8x256xf32, #tpu.memory_space<vmem>>, vector<1x4x256xf32>
    %104 = vector.shape_cast %103 : vector<1x4x256xf32> to vector<4x256xf32>
    %105 = vector.shape_cast %5 : vector<4x256xf32> to vector<1x4x256xf32>
    tpu.vector_store %arg6[%c0_57, %c0_58, %c0_59], %105 {strides = array<i32>} : memref<1x8x256xf32, #tpu.memory_space<vmem>>, vector<1x4x256xf32>,
    %c0_60 = arith.constant 0 : index
    %c4_61 = arith.constant 4 : index
    %c0_62 = arith.constant 0 : index
    %106 = vector.load %arg6[%c0_60, %c4_61, %c0_62] : memref<1x8x256xf32, #tpu.memory_space<vmem>>, vector<1x4x256xf32>
    %107 = vector.shape_cast %106 : vector<1x4x256xf32> to vector<4x256xf32>
    %108 = vector.shape_cast %102 : vector<4x256xf32> to vector<1x4x256xf32>
    tpu.vector_store %arg6[%c0_60, %c4_61, %c0_62], %108 {strides = array<i32>} : memref<1x8x256xf32, #tpu.memory_space<vmem>>, vector<1x4x256xf32>,
    return
  }
  func.func @transform_0(%arg0: i32) -> (i32, i32, i32) {
    %c0_i32 = arith.constant 0 : i32
    %c0_i32_0 = arith.constant 0 : i32
    %c0_i32_1 = arith.constant 0 : i32
    return %arg0, %c0_i32, %c0_i32_0 : i32, i32, i32
  }
  func.func @transform_1(%arg0: i32) -> (i32, i32) {
    %c0_i32 = arith.constant 0 : i32
    %c0_i32_0 = arith.constant 0 : i32
    %c0_i32_1 = arith.constant 0 : i32
    return %c0_i32, %c0_i32_0 : i32, i32
  }
  func.func @transform_2(%arg0: i32) -> (i32, i32, i32) {
    %c0_i32 = arith.constant 0 : i32
    %c0_i32_0 = arith.constant 0 : i32
    %c0_i32_1 = arith.constant 0 : i32
    %c0_i32_2 = arith.constant 0 : i32
    return %c0_i32, %c0_i32_0, %c0_i32_1 : i32, i32, i32
  }
  func.func @transform_3(%arg0: i32) -> (i32, i32) {
    %c0_i32 = arith.constant 0 : i32
    %c0_i32_0 = arith.constant 0 : i32
    %c0_i32_1 = arith.constant 0 : i32
    return %c0_i32, %c0_i32_0 : i32, i32
  }
  func.func @transform_4(%arg0: i32) -> (i32, i32) {
    %c0_i32 = arith.constant 0 : i32
    %c0_i32_0 = arith.constant 0 : i32
    %c0_i32_1 = arith.constant 0 : i32
    return %c0_i32, %c0_i32_0 : i32, i32
  }
  func.func @transform_5(%arg0: i32) -> (i32, i32, i32) {
    %c0_i32 = arith.constant 0 : i32
    %c0_i32_0 = arith.constant 0 : i32
    %c0_i32_1 = arith.constant 0 : i32
    return %arg0, %c0_i32, %c0_i32_0 : i32, i32, i32
  }
}

</mosaic_0001>

<bundles_post_ra>
// kernel: conv_normal.1
= control target key start
LH: loop header
LB: loop body
LE: loop exit
PB: predicated region body
PF: predicated region fallthrough
CT: control target
= control target key end

     0   :  { %s1478_s18 = smov 0   ;;  %s1637_s0 = inlined_call_operand.vmem [shape: f32[2,4,256], index: 0, kind: input, shape index: {}]   ;;  %s1638_s1 = inlined_call_operand.vmem [shape: f32[16,4], index: 1, kind: input, shape index: {}]   ;;  %s1639_s2 = inlined_call_operand.vmem [shape: f32[9,4,16], index: 2, kind: input, shape index: {}]   ;;  %s1640_s3 = inlined_call_operand.vmem [shape: f32[40,1], index: 3, kind: input, shape index: {}]   ;;  %s1641_s4 = inlined_call_operand.vmem [shape: f32[9,256], index: 4, kind: input, shape index: {}]   ;;  %s1642_s5 = inlined_call_operand.vmem [shape: f32[2,8,256], index: 5, kind: output, shape index: {}]  }
   0x1 LB: > { %s1366_s19 = sadd.s32 4294967295, %s1435_s18   ;;  %p1370_p0 = scmp.ge.s32.totalorder %s1435_s18, 1  ;;  %s1435_s18 = sphi %s1478_s18, %s15_s18  }
   0x2   : > { %p187_p1 = scmp.lt.s32.totalorder %s1435_s18, 3 }
   0x4   : > { %p188_p2 = pnand %p1370_p0, %p187_p1 }
   0x5   : > { %p215_p3 = scmp.lt.s32.totalorder (!%p188_p2), %s1366_s19, 1  ;;  %s1440_s14 = smov (!%p188_p2), 17  }
   0x6   : > { %191 = sbr.rel (%p188_p2) target bundleno = 706 (0x2c2), region = 40  ;;  %s1441_s15 = smov (!%p188_p2), 15  }
   0x7   : > { %s1442_s16 = smov (!%p188_p2), 16   ;;  %s1443_s17 = smov (!%p188_p2), 1  }
   0x8   : > { %s1445_s20 = smov (!%p188_p2), 127   ;;  %s1446_s21 = smov (!%p188_p2), 112  }
   0x9   : > { %s1447_s22 = smov (!%p188_p2), 111  }
   0xb   : > { %v225_v0 = vld [vmem:[%s1640_s3] sm:$0xf]  ;;  %v1437_v1 = vmov 0   ;;  %v226_v2 = vld [vmem:[%s1640_s3 + $0x4] sm:$0xf]  ;;  %s1644_s19 = smov (!%p215_p3, %s1366_s19), 1  ;;  %v239_v12 = vlaneseq }
   0xc   : > { %1426 = vset.pattern.permute.xlu0 %v1437_v1  ;;  %1427 = vset.pattern.permute.xlu1 %v1437_v1  ;;  %s1405_s24 = sshll.u32 %s1644_s19, 3  ;;  %s1406_s25 = sshll.u32 %s1644_s19, 4  ;;  %v230_v3 = vld [vmem:[%s1640_s3 + $0x20] sm:$0xff]  ;;  %v1438_v6 = vmov 0.0   ;;  %v228_v7 = vld [vmem:[%s1640_s3 + $0x10] sm:$0xff]  ;;  %v227_v8 = vld [vmem:[%s1640_s3 + $0x8] sm:$0xff] }
   0xd   : > { %234 = vperm.xlu0 %1426, %v225_v0   ;;  %s219_s28 = scalar_lea.vmem %s1637_s0, %s1405_s24  ;;  %s1498_s6 = scalar_lea.vmem %s1642_s5, %s1406_s25  ;;  %339 = vmatprep.mubr.f32.mxu0 %v1438_v6  ;;  %v229_v9 = vld [vmem:[%s1640_s3 + $0x18] sm:$0xff]  ;;  %v1439_v10 = vmov 839922192   ;;  %v1516_v14 = vshrl.u32 %v239_v12, 7  ;;  %vm270_vm0 = vcmask 1043456   ;;  %v259_v24 = vld [vmem:[%s1638_s1] sm:$0xff] }
   0xe   : > { %v231_v4 = vld [vmem:[%s219_s28] sm:$0xff]  ;;  %453 = vmatprep.mubr.f32.mxu1 %v1438_v6  ;;  %359 = vperm.xlu1 %1427, %v228_v7   ;;  %v237_v11 = vunpack.c.l.s4 %v1439_v10  ;;  %vm263_vm1 = vcmask 31744   ;;  %v260_v25 = vld [vmem:[%s1638_s1 + $0x8] sm:$0xff]  ;;  %vm385_vm2 = vcmask 130048   ;;  %v1389_v49 = vld [vmem:[%s1639_s2 + $0x10] sm:$0xf] }
   0xf   : > { %v1299_v5 = vcombine.high %v231_v4, %v231_v4  ;;  %1301 = vst [vmem:[%s1498_s6] sm:$0xf] %v231_v4  ;;  %v384_v46 = vld [vmem:[%s1639_s2] sm:$0xf]  ;;  %v1383_v47 = vld [vmem:[%s1639_s2 + $0x8] sm:$0xf]  ;;  %s1444_s19 = smov 113  }
  0x10   : > { %v238_v13 = vunpack.c.0.s8 %v237_v11  ;;  %v1380_v48 = vld [vmem:[%s1639_s2 + $0x4] sm:$0xf]  ;;  %v1386_v50 = vld [vmem:[%s1639_s2 + $0xc] sm:$0xf]  ;;  %v1394_v51 = vld [vmem:[%s1639_s2 + $0x18] sm:$0xf] }
  0x11   : > { %247 = vperm.xlu0 %1426, %v226_v2   ;;  %1302 = vst [vmem:[%s1498_s6 + $0x8] sm:$0xf] %v1299_v5  ;;  %v1391_v52 = vld [vmem:[%s1639_s2 + $0x14] sm:$0xf]  ;;  %v1400_v53 = vld [vmem:[%s1639_s2 + $0x20] sm:$0xf] }
  0x12   : > { %354 = vperm.xlu1 %1427, %v227_v8   ;;  %v241_v15 = vsub.s32 %v238_v13, %v1516_v14  ;;  %v1397_v54 = vld [vmem:[%s1639_s2 + $0x1c] sm:$0xf]  ;;  %v1382_v12 = vld [vmem:[%s1641_s4 + $0x1] ss:$8 sm:$0x3]  ;;  %v1578_v13 = vsub.s32 0, %v1516_v14 }
  0x13   : > { %vm467_vm3 = vcmask 138240   ;;  %vm673_vm4 = vcmask 121856   ;;  %vm778_vm5 = vcmask 7168   ;;  %vm1065_vm6 = vcmask 924672  }
  0x14   : > { %vm960_vm7 = vcmask 1039360   ;;  %vm1170_vm8 = vcmask 916480   ;;  %vm1275_vm9 = vcmask 908288  }
  0x15   : > { %373 = vperm.xlu0 %1426, %v230_v3  }
  0x16   : > { %368 = vperm.xlu1 %1427, %v229_v9  }
  0x88   : > { %v235_v16 = vpop.permute.xlu0 %234 }
  0x89   : > { %v242_v17 = vrot.slane %v235_v16, %v241_v15  ;;  %v360_v26 = vpop.permute.xlu1 %359 }
  0x8b   : > { %v244_v19 = vmul.f32 %v242_v17, %v231_v4  ;;  %v472_v17 = vld [vmem:[%s1641_s4] ss:$8 sm:$0x3] }
  0x8c   : > { %v248_v18 = vpop.permute.xlu0 %247 }
  0x8d   : > { %v255_v20 = vrot.slane %v248_v18, %v241_v15  ;;  %v355_v28 = vpop.permute.xlu1 %354  ;;  %v1581_v15 = vsub.s32 1, %v1516_v14  ;;  %v1385_v14 = vld [vmem:[%s1641_s4 + $0x2] ss:$8 sm:$0x3] }
  0x8f   : > { %v257_v21 = vadd.f32 %v255_v20, %v244_v19  ;;  %v579_v19 = vrot.slane %v1382_v12, %v1578_v13  ;;  %v583_v20 = vrot.slane %v1382_v12, %v1581_v15  ;;  %v1402_v12 = vld [vmem:[%s1641_s4 + $0x10] ss:$8 sm:$0x3] }
  0x90   : > { %v374_v35 = vpop.permute.xlu0 %373 }
  0x91   : > { %v258_v22 = vmax.f32 %v257_v21, 0.0  ;;  %v369_v36 = vpop.permute.xlu1 %368  ;;  %v477_v21 = vrot.slane %v472_v17, %v1578_v13 }
  0x93   : > { %v262_v23 = vcombine.high %v258_v22, %v258_v22 }
  0x95   : > { %1375 = vmatprep.subr.msk.mxu0 %vm270_vm0, %v262_v23 }
  0x96   : > { %1376 = vmatpush1.msk.msra.mxu0 %vm270_vm0, %v258_v22  ;;  %v481_v22 = vrot.slane %v472_v17, %v1581_v15 }
  0x97   : > { %1377 = vmatmul.mubr.msk.f32.vlgmr.msra.gmra.mxu0 %vm263_vm1, %v259_v24 }
  0x98   : > { %345 = vmatprep.mubr.f32.mxu0 %v1438_v6 }
  0x9b   : > { %1378 = vmatmul.mubr.msk.f32.gmra.mxu0 %vm263_vm1, %v260_v25 }
  0x9c   : > { %659 = vmatprep.mubr.f32.mxu0 %v1438_v6 }
 0x157   : > { %v341_v27 = vpop.f32.mrf.mxu0 }
 0x158   : > { %v362_v33 = vmul.f32 %v355_v28, %v341_v27 }
 0x159   : > { %v343_v29 = vpop.f32.mrf.mxu0 }
 0x15a   : > { %v363_v31 = vmul.f32 %v355_v28, %v343_v29  ;;  %v376_v41 = vadd.f32 %v369_v36, %v362_v33 }
 0x15b   : > { %v347_v30 = vpop.f32.mrf.mxu0 }
 0x15c   : > { %v364_v32 = vmul.f32 %v360_v26, %v347_v30  ;;  %v377_v39 = vadd.f32 %v369_v36, %v363_v31  ;;  %v380_v45 = vmax.f32 %v376_v41, 0.0  ;;  %v1388_v31 = vld [vmem:[%s1641_s4 + $0x3] ss:$8 sm:$0x3] }
 0x15d   : > { %v349_v34 = vpop.f32.mrf.mxu0  ;;  %v789_v41 = vrot.slane %v1388_v31, %v1578_v13 }
 0x15e   : > { %v365_v37 = vmul.f32 %v360_v26, %v349_v34  ;;  %v378_v38 = vadd.f32 %v374_v35, %v364_v32  ;;  %v381_v44 = vmax.f32 %v377_v39, 0.0  ;;  %v684_v34 = vrot.slane %v1385_v14, %v1578_v13 }
 0x160   : > { %v379_v40 = vadd.f32 %v374_v35, %v365_v37  ;;  %v382_v43 = vmax.f32 %v378_v38, 0.0  ;;  %v688_v35 = vrot.slane %v1385_v14, %v1581_v15 }
 0x162   : > { %v383_v42 = vmax.f32 %v379_v40, 0.0 }
 0x164   : > { %417 = vmatprep.subr.mxu1 %v383_v42  ;;  %623 = vmatprep.subr.mxu0 %v383_v42 }
 0x165   : > { %418 = vmatpush1.msra.mxu1 %v382_v43  ;;  %624 = vmatpush1.msra.mxu0 %v382_v43 }
 0x166   : > { %419 = vmatprep.subr.mxu1 %v381_v44  ;;  %625 = vmatprep.subr.mxu0 %v381_v44 }
 0x167   : > { %420 = vmatpush1.msra.mxu1 %v380_v45  ;;  %626 = vmatpush1.msra.mxu0 %v380_v45 }
 0x168   : > { %1379 = vmatmul.mubr.msk.f32.vlgmr.msra.gmra.mxu1 %vm385_vm2, %v384_v46  ;;  %519 = vmatprep.subr.mxu1 %v383_v42 }
 0x169   : > { %833 = vmatprep.subr.mxu0 %v383_v42  ;;  %520 = vmatpush1.msra.mxu1 %v382_v43 }
 0x16a   : > { %1384 = vmatmul.mubr.msk.f32.vlgmr.msra.gmra.mxu0 %vm385_vm2, %v1383_v47  ;;  %521 = vmatprep.subr.mxu1 %v381_v44  ;;  %v1396_v47 = vld [vmem:[%s1641_s4 + $0x6] ss:$8 sm:$0x3] }
 0x16b   : > { %834 = vmatpush1.msra.mxu0 %v382_v43  ;;  %522 = vmatpush1.msra.mxu1 %v380_v45 }
 0x16c   : > { %835 = vmatprep.subr.mxu0 %v381_v44  ;;  %555 = vmatprep.mubr.f32.mxu1 %v1438_v6 }
 0x16d   : > { %836 = vmatpush1.msra.mxu0 %v380_v45  ;;  %728 = vmatprep.subr.mxu1 %v383_v42 }
 0x16e   : > { %869 = vmatprep.mubr.f32.mxu0 %v1438_v6  ;;  %1016 = vmatprep.subr.mxu0 %v383_v42 }
 0x16f   : > { %1381 = vmatmul.mubr.msk.f32.vlgmr.msra.gmra.mxu1 %vm385_vm2, %v1380_v48  ;;  %1390 = vmatmul.mubr.msk.f32.vlgmr.msra.gmra.mxu0 %vm385_vm2, %v1389_v49 }
 0x170   : > { %729 = vmatpush1.msra.mxu1 %v382_v43  ;;  %1017 = vmatpush1.msra.mxu0 %v382_v43 }
 0x171   : > { %730 = vmatprep.subr.mxu1 %v381_v44  ;;  %1018 = vmatprep.subr.mxu0 %v381_v44 }
 0x172   : > { %731 = vmatpush1.msra.mxu1 %v380_v45  ;;  %1019 = vmatpush1.msra.mxu0 %v380_v45 }
 0x173   : > { %764 = vmatprep.mubr.f32.mxu1 %v1438_v6  ;;  %911 = vmatprep.subr.mxu1 %v383_v42 }
 0x174   : > { %1052 = vmatprep.mubr.f32.mxu0 %v1438_v6  ;;  %1226 = vmatprep.subr.mxu0 %v383_v42 }
 0x175   : > { %1387 = vmatmul.mubr.msk.f32.vlgmr.msra.gmra.mxu1 %vm385_vm2, %v1386_v50  ;;  %1395 = vmatmul.mubr.msk.f32.vlgmr.msra.gmra.mxu0 %vm385_vm2, %v1394_v51 }
 0x176   : > { %912 = vmatpush1.msra.mxu1 %v382_v43  ;;  %1227 = vmatpush1.msra.mxu0 %v382_v43 }
 0x177   : > { %913 = vmatprep.subr.mxu1 %v381_v44  ;;  %1228 = vmatprep.subr.mxu0 %v381_v44 }
 0x178   : > { %914 = vmatpush1.msra.mxu1 %v380_v45  ;;  %1229 = vmatpush1.msra.mxu0 %v380_v45 }
 0x179   : > { %947 = vmatprep.mubr.f32.mxu1 %v1438_v6  ;;  %1121 = vmatprep.subr.mxu1 %v383_v42  ;;  %v793_v42 = vrot.slane %v1388_v31, %v1581_v15 }
 0x17a   : > { %1392 = vmatmul.mubr.msk.f32.vlgmr.msra.gmra.mxu1 %vm385_vm2, %v1391_v52  ;;  %1262 = vmatprep.mubr.f32.mxu0 %v1438_v6 }
 0x17b   : > { %1122 = vmatpush1.msra.mxu1 %v382_v43  ;;  %1157 = vmatprep.mubr.f32.mxu1 %v1438_v6  ;;  %v1393_v43 = vld [vmem:[%s1641_s4 + $0x5] ss:$8 sm:$0x3] }
 0x17c   : > { %1123 = vmatprep.subr.mxu1 %v381_v44  ;;  %1401 = vmatmul.mubr.msk.f32.vlgmr.msra.gmra.mxu0 %vm385_vm2, %v1400_v53  ;;  %v972_v51 = vrot.slane %v1393_v43, %v1578_v13  ;;  %v976_v52 = vrot.slane %v1393_v43, %v1581_v15  ;;  %v1399_v53 = vld [vmem:[%s1641_s4 + $0x7] ss:$8 sm:$0x3] }
 0x17d   : > { %1124 = vmatpush1.msra.mxu1 %v380_v45 }
 0x17e   : > { %1398 = vmatmul.mubr.msk.f32.vlgmr.msra.gmra.mxu1 %vm385_vm2, %v1397_v54 }
 0x228   : > { %v455_v55 = vpop.f32.mrf.mxu1 }
 0x229   : > { %465 = vrot.lane.b32.xlu1 %v455_v55, %s1440_s14 }
 0x22a   : > { %v457_v56 = vpop.f32.mrf.mxu1  ;;  %v661_v57 = vpop.f32.mrf.mxu0 }
 0x22b   : > { %461 = vrot.lane.b32.xlu0 %v457_v56, %s1440_s14 }
 0x22c   : > { %v663_v58 = vpop.f32.mrf.mxu0 }
 0x22d   : > { %671 = vrot.lane.b32.xlu1 %v661_v57, %s1441_s15 }
 0x22f   : > { %667 = vrot.lane.b32.xlu0 %v663_v58, %s1441_s15  ;;  %v557_v59 = vpop.f32.mrf.mxu1  ;;  %v1570_v60 = vpop.f32.mrf.mxu0  ;;  %v1077_v58 = vrot.slane %v1396_v47, %v1578_v13 }
 0x231   : > { %567 = vrot.lane.b32.xlu1 %v557_v59, %s1442_s16  ;;  %v1572_v61 = vpop.f32.mrf.mxu0  ;;  %v559_v62 = vpop.f32.mrf.mxu1  ;;  %v1081_v59 = vrot.slane %v1396_v47, %v1581_v15 }
 0x233   : > { %563 = vrot.lane.b32.xlu0 %v559_v62, %s1442_s16 }
 0x235   : > { %v766_v63 = vpop.f32.mrf.mxu1  ;;  %v1054_v0 = vpop.f32.mrf.mxu0 }
 0x236   : > { %776 = vrot.lane.b32.xlu1 %v766_v63, %s1443_s17 }
 0x237   : > { %1061 = vrot.lane.b32.xlu0 %v1054_v0, %s1444_s19  ;;  %v768_v1 = vpop.f32.mrf.mxu1  ;;  %v1056_v2 = vpop.f32.mrf.mxu0 }
 0x23a   : > { %1063 = vrot.lane.b32.xlu1 %v1056_v2, %s1444_s19  ;;  %v949_v3 = vpop.f32.mrf.mxu1  ;;  %v1182_v2 = vrot.slane %v1399_v53, %v1578_v13 }
 0x23b   : > { %772 = vrot.lane.b32.xlu0 %v768_v1, %s1443_s17 }
 0x23c   : > { %v951_v4 = vpop.f32.mrf.mxu1  ;;  %v1264_v6 = vpop.f32.mrf.mxu0 }
 0x23e   : > { %958 = vrot.lane.b32.xlu1 %v951_v4, %s1445_s20  ;;  %v1159_v5 = vpop.f32.mrf.mxu1  ;;  %v1266_v8 = vpop.f32.mrf.mxu0 }
 0x23f   : > { %956 = vrot.lane.b32.xlu0 %v949_v3, %s1445_s20  ;;  %v1186_v3 = vrot.slane %v1399_v53, %v1581_v15 }
 0x240   : > { %v1161_v7 = vpop.f32.mrf.mxu1 }
 0x242   : > { %1168 = vrot.lane.b32.xlu1 %v1161_v7, %s1446_s21 }
 0x243   : > { %1166 = vrot.lane.b32.xlu0 %v1159_v5, %s1446_s21 }
 0x246   : > { %1273 = vrot.lane.b32.xlu1 %v1266_v8, %s1447_s22 }
 0x247   : > { %1271 = vrot.lane.b32.xlu0 %v1264_v6, %s1447_s22 }
 0x29b   : > { %v466_v9 = vpop.permute.xlu1 %465 }
 0x29d   : > { %v462_v10 = vpop.permute.xlu0 %461 }
 0x29e   : > { %v468_v24 = vsel %vm467_vm3, %v466_v9, %v462_v10  ;;  %v471_v25 = vsel %vm467_vm3, %v462_v10, %v466_v9 }
 0x29f   : > { %v672_v11 = vpop.permute.xlu1 %671  ;;  %v484_v32 = vmul.f32 %v477_v21, %v471_v25  ;;  %v485_v33 = vmul.f32 %v481_v22, %v468_v24 }
 0x2a1   : > { %v668_v16 = vpop.permute.xlu0 %667 }
 0x2a2   : > { %v674_v37 = vsel %vm673_vm4, %v672_v11, %v668_v16  ;;  %v677_v38 = vsel %vm673_vm4, %v668_v16, %v672_v11 }
 0x2a3   : > { %v568_v18 = vpop.permute.xlu1 %567  ;;  %v691_v45 = vmul.f32 %v684_v34, %v677_v38  ;;  %v692_v46 = vmul.f32 %v688_v35, %v674_v37 }
 0x2a5   : > { %v564_v23 = vpop.permute.xlu0 %563 }
 0x2a6   : > { %v569_v26 = vsel %vm385_vm2, %v568_v18, %v564_v23  ;;  %v572_v27 = vsel %vm385_vm2, %v564_v23, %v568_v18 }
 0x2a7   : > { %v586_v28 = vmul.f32 %v579_v19, %v572_v27  ;;  %v587_v29 = vmul.f32 %v583_v20, %v569_v26 }
 0x2a8   : > { %v777_v30 = vpop.permute.xlu1 %776 }
 0x2a9   : > { %v1062_v36 = vpop.permute.xlu0 %1061  ;;  %v588_v39 = vadd.f32 %v586_v28, %v484_v32  ;;  %v589_v40 = vadd.f32 %v587_v29, %v485_v33 }
 0x2ab   : > { %v693_v54 = vadd.f32 %v691_v45, %v588_v39  ;;  %v694_v55 = vadd.f32 %v692_v46, %v589_v40 }
 0x2ac   : > { %v1064_v44 = vpop.permute.xlu1 %1063 }
 0x2ad   : > { %v773_v48 = vpop.permute.xlu0 %772  ;;  %v1066_v4 = vsel %vm1065_vm6, %v1062_v36, %v1064_v44  ;;  %v1070_v5 = vsel %vm1065_vm6, %v1064_v44, %v1062_v36 }
 0x2ae   : > { %v779_v49 = vsel %vm778_vm5, %v777_v30, %v773_v48  ;;  %v782_v50 = vsel %vm778_vm5, %v773_v48, %v777_v30  ;;  %v1084_v17 = vmul.f32 %v1077_v58, %v1066_v4  ;;  %v1085_v18 = vmul.f32 %v1081_v59, %v1070_v5 }
 0x2af   : > { %v796_v56 = vmul.f32 %v789_v41, %v782_v50  ;;  %v797_v57 = vmul.f32 %v793_v42, %v779_v49 }
 0x2b0   : > { %v959_v62 = vpop.permute.xlu1 %958 }
 0x2b1   : > { %v798_v63 = vadd.f32 %v796_v56, %v693_v54  ;;  %v799_v0 = vadd.f32 %v797_v57, %v694_v55  ;;  %v957_v1 = vpop.permute.xlu0 %956 }
 0x2b2   : > { %v961_v6 = vsel %vm960_vm7, %v957_v1, %v959_v62  ;;  %v965_v7 = vsel %vm960_vm7, %v959_v62, %v957_v1 }
 0x2b3   : > { %v876_v8 = vadd.f32 %v1570_v60, %v798_v63  ;;  %v877_v9 = vadd.f32 %v1572_v61, %v799_v0  ;;  %v979_v10 = vmul.f32 %v972_v51, %v961_v6  ;;  %v980_v11 = vmul.f32 %v976_v52, %v965_v7 }
 0x2b4   : > { %v1169_v16 = vpop.permute.xlu1 %1168  ;;  %v1287_v60 = vrot.slane %v1402_v12, %v1578_v13  ;;  %v1291_v61 = vrot.slane %v1402_v12, %v1581_v15 }
 0x2b5   : > { %v981_v19 = vadd.f32 %v979_v10, %v876_v8  ;;  %v982_v20 = vadd.f32 %v980_v11, %v877_v9  ;;  %v1167_v21 = vpop.permute.xlu0 %1166 }
 0x2b6   : > { %v1171_v22 = vsel %vm1170_vm8, %v1167_v21, %v1169_v16  ;;  %v1175_v23 = vsel %vm1170_vm8, %v1169_v16, %v1167_v21 }
 0x2b7   : > { %v1086_v24 = vadd.f32 %v1084_v17, %v981_v19  ;;  %v1087_v25 = vadd.f32 %v1085_v18, %v982_v20  ;;  %v1189_v14 = vmul.f32 %v1182_v2, %v1171_v22  ;;  %v1190_v26 = vmul.f32 %v1186_v3, %v1175_v23 }
 0x2b8   : > { %v1274_v27 = vpop.permute.xlu1 %1273 }
 0x2b9   : > { %v1272_v28 = vpop.permute.xlu0 %1271  ;;  %v1191_v31 = vadd.f32 %v1189_v14, %v1086_v24  ;;  %v1192_v32 = vadd.f32 %v1190_v26, %v1087_v25 }
 0x2ba   : > { %v1276_v29 = vsel %vm1275_vm9, %v1272_v28, %v1274_v27  ;;  %v1280_v30 = vsel %vm1275_vm9, %v1274_v27, %v1272_v28 }
 0x2bb   : > { %v1294_v33 = vmul.f32 %v1287_v60, %v1276_v29  ;;  %v1295_v34 = vmul.f32 %v1291_v61, %v1280_v30 }
 0x2bd   : > { %v1296_v35 = vadd.f32 %v1294_v33, %v1191_v31  ;;  %v1297_v13 = vadd.f32 %v1295_v34, %v1192_v32 }
 0x2bf   : > { %v1305_v36 = vrot.slane %v1296_v35, 4  ;;  %v1306_v15 = vrot.slane %v1297_v13, 4 }
 0x2c1   : > { %1309 = vst [vmem:[%s1498_s6] sm:$0xf0] %v1305_v36  ;;  %1310 = vst [vmem:[%s1498_s6 + $0x8] sm:$0xf0] %v1306_v15 }
 0x2c2 PF: > { %s15_s18 = sadd.s32 1, %s1435_s18  }
 0x2c3   : > { %p12_p4 = scmp.ge.s32.totalorder %s15_s18, 4  }
 0x2c5   :  { %14 = sbr.rel (!%p12_p4) target bundleno = 1 (0x1), region = 85 }

</bundles_post_ra>
